<compile_context>
chip_gen: v5e
topology: v5e:2x2
jax: 0.10.0
libtpu: 0.0.40
codegen_flags: <defaults>
</compile_context>

<pallas_src>
import math

import jax
import jax.numpy as jnp
from jax.experimental import pallas as pl
from jax.experimental.pallas import tpu as pltpu


def _round_up(a: int, b: int) -> int:
    return (a + b - 1) // b * b


def _value_projection_kernel(x_ref, w_ref, b_ref, o_ref):
    """out_tile = x_tile @ W + b, accumulated in f32 on the MXU."""
    acc = jnp.dot(x_ref[...], w_ref[...], preferred_element_type=jnp.float32)
    o_ref[...] = (acc + b_ref[...].astype(jnp.float32)).astype(o_ref.dtype)


def _pick_row_packing(n: int, cout: int) -> int:
    """Rows packed per lane-row so the packed output is 128-lane dense."""
    if cout >= 128 or 128 % cout != 0:
        return 1
    # Largest packing that keeps the output lane-dense AND divides N exactly,
    # so the wrapper reshape is a free contiguous reshape (no padding copy).
    return math.gcd(128 // cout, n)


def _pick_block_rows(n_rows: int, row_in: int, row_out: int, itemsize: int,
                     vmem_budget_bytes: int = 8 << 20,
                     max_block_rows: int = 8192) -> int:
    """Largest 8-aligned row tile whose double-buffered footprint fits VMEM.

    Footprint = 2 * block_rows * (row_in + row_out) * itemsize   (x / out tiles)
              + 2 * (row_in * row_out + row_out) * itemsize      (weights + bias)
    """
    weight_bytes = 2 * (row_in * row_out + row_out) * itemsize
    per_row_bytes = 2 * (row_in + row_out) * itemsize
    block_rows = (vmem_budget_bytes - weight_bytes) // per_row_bytes
    block_rows = max(8, min(int(block_rows), max_block_rows))
    block_rows = (block_rows // 8) * 8
    # Never larger than the (8-aligned) problem size.
    return min(block_rows, _round_up(n_rows, 8))


def spatial_attention_forward(x, edge_index, wq, bq, wk, bk, wv, bv,
                              *, num_heads=1, block_rows=None):
    """Forward pass of SpatialAttentionLayer as a Pallas TPU kernel.

    Because sum_k softmax(score)[b,h,k] == 1 in the reference's degenerate
    einsums, the output equals x @ Wv + bv; wq/bq/wk/bk and edge_index are
    mathematically dead for this forward pass (kept for API parity).
    Projection weights are stored pre-transposed as (Cin, Cout) = PyTorch
    weight.T, so the in-kernel linear is x @ W + b.
    """
    del edge_index, wq, bq, wk, bk  # dead in this forward pass

    n, cin = x.shape
    cout = wv.shape[1]
    assert cout % num_heads == 0, "out_channels must be divisible by num_heads"

    # ---- lane-dense row packing (pure layout plumbing, no extra HBM traffic).
    g = _pick_row_packing(n, cout)
    p_in, p_out = g * cin, g * cout
    n_packed = n // g

    x_p = x.reshape(n_packed, p_in)                    # contiguous reshape (free)
    w_p = jnp.kron(jnp.eye(g, dtype=wv.dtype), wv)     # block-diagonal (p_in, p_out)
    b_p = jnp.tile(bv.reshape(1, cout), (1, g))        # (1, p_out)

    # ---- tile size: as tall as the VMEM budget allows.
    if block_rows is None:
        block_rows = _pick_block_rows(n_packed, p_in, p_out, x.dtype.itemsize)
    else:
        block_rows = max(8, min(_round_up(block_rows, 8), _round_up(n_packed, 8)))

    grid = (pl.cdiv(n_packed, block_rows),)  # Pallas masks the ragged last block.

    # TODO(synk): if this layer is ever used with large cin (>~256), add an
    # "arbitrary" K grid axis with an f32 VMEM accumulator instead of keeping
    # the full (block_rows, g*cin) tile resident.
    out = pl.pallas_call(
        _value_projection_kernel,
        out_shape=jax.ShapeDtypeStruct((n_packed, p_out), x.dtype),
        grid_spec=pltpu.PrefetchScalarGridSpec(
            num_scalar_prefetch=0,
            grid=grid,
            in_specs=[
                # x row-tile: (block_rows, g*cin)
                pl.BlockSpec((block_rows, p_in), lambda i: (i, 0)),
                # Weight / bias have a constant block index, so their DMAs are
                # not re-issued across grid steps.
                pl.BlockSpec((p_in, p_out), lambda i: (0, 0)),
                pl.BlockSpec((1, p_out), lambda i: (0, 0)),
            ],
            out_specs=pl.BlockSpec((block_rows, p_out), lambda i: (i, 0)),
        ),
        compiler_params=pltpu.CompilerParams(
            # Independent row tiles -> shard the grid across TensorCores.
            dimension_semantics=("parallel",)),
    )(x_p, w_p, b_p)

    return out.reshape(n, cout)                        # contiguous reshape (free)


def _reference_forward(x, wq, bq, wk, bk, wv, bv, num_heads):
    """Pure-JAX emulation of the full PyTorch forward (incl. softmax)."""
    n = x.shape[0]
    cout = wq.shape[1]
    d = cout // num_heads
    scale = float(d) ** -0.5
    q = (x @ wq + bq[0]).reshape(n, num_heads, d)
    k = (x @ wk + bk[0]).reshape(n, num_heads, d)
    v = (x @ wv + bv[0]).reshape(n, num_heads, d)
    score = jnp.sum(q, axis=-1, keepdims=True) * k * scale
    attn = jax.nn.softmax(score, axis=-1)
    out = jnp.sum(attn, axis=-1, keepdims=True) * v
    return out.reshape(n, cout)


if __name__ == "__main__":
    key = jax.random.PRNGKey(0)

    def make_case(case_key, n, cin, cout, heads):
        kx, kq, kk, kv, kbq, kbk, kbv, ke = jax.random.split(case_key, 8)
        x = jax.random.normal(kx, (n, cin), dtype=jnp.float32)
        # Dummy edge_index (unused by the forward pass, kept for signature parity).
        edge_index = jax.random.randint(ke, (2, 3 * n), 0, n, dtype=jnp.int32)
        # Weights stored as (Cin, Cout) = PyTorch weight.T.
        wq = jax.random.normal(kq, (cin, cout), dtype=jnp.float32) * 0.1
        wk = jax.random.normal(kk, (cin, cout), dtype=jnp.float32) * 0.1
        wv = jax.random.normal(kv, (cin, cout), dtype=jnp.float32) * 0.1
        bq = jax.random.normal(kbq, (1, cout), dtype=jnp.float32) * 0.1
        bk = jax.random.normal(kbk, (1, cout), dtype=jnp.float32) * 0.1
        bv = jax.random.normal(kbv, (1, cout), dtype=jnp.float32) * 0.1
        return (x, edge_index, wq, bq, wk, bk, wv, bv, heads)

    k1, k2 = jax.random.split(key)

    cases = [
        # Small, module-consistent shapes: N graph nodes, in_channels features.
        (make_case(k1, 16, 8, 32, 2), dict()),
        # N/g not a multiple of the row tile -> exercises multi-step grid with
        # a ragged, masked last block (no wrapper-side padding).
        (make_case(k2, 1000, 8, 32, 4), dict(block_rows=64)),
    ]

    for (x, edge_index, wq, bq, wk, bk, wv, bv, heads), kw in cases:
        out = spatial_attention_forward(
            x, edge_index, wq, bq, wk, bk, wv, bv, num_heads=heads, **kw)
        out = jax.block_until_ready(out)

        ref = _reference_forward(x, wq, bq, wk, bk, wv, bv, heads)
        assert out.shape == ref.shape
        assert jnp.allclose(out, ref, atol=1e-5, rtol=1e-5), (
            f"max abs err {jnp.max(jnp.abs(out - ref))}")

    print("KERNEL_OK")
</pallas_src>

<mosaic_0001>
module attributes {stable_mosaic.version = 11 : i64} {
  func.func @_value_projection_kernel(%arg0: i32, %arg1: memref<8x32xf32, #tpu.memory_space<vmem>>, %arg2: memref<32x128xf32, #tpu.memory_space<vmem>>, %arg3: memref<1x128xf32, #tpu.memory_space<vmem>>, %arg4: memref<8x128xf32, #tpu.memory_space<vmem>>) attributes {dimension_semantics = [#tpu.dimension_semantics<parallel>], iteration_bounds = array<i64: 1>, scalar_prefetch = 0 : i64, scratch_operands = 0 : i64, tpu.core_type = #tpu.core_type<tc>, window_params = [{transform_indices = @transform_0, window_bounds = array<i64: 8, 32>}, {pipeline_mode = #tpu.pipeline_mode<synchronous>, transform_indices = @transform_1, window_bounds = array<i64: 32, 128>}, {pipeline_mode = #tpu.pipeline_mode<synchronous>, transform_indices = @transform_2, window_bounds = array<i64: 1, 128>}, {transform_indices = @transform_3, window_bounds = array<i64: 8, 128>}]} {
    %c0 = arith.constant 0 : index
    %c0_0 = arith.constant 0 : index
    %0 = vector.load %arg1[%c0, %c0_0] : memref<8x32xf32, #tpu.memory_space<vmem>>, vector<8x32xf32>
    %c0_1 = arith.constant 0 : index
    %c0_2 = arith.constant 0 : index
    %1 = vector.load %arg2[%c0_1, %c0_2] : memref<32x128xf32, #tpu.memory_space<vmem>>, vector<32x128xf32>
    %cst = arith.constant dense<0.000000e+00> : vector<8x128xf32>
    %2 = tpu.matmul %0, %1, %cst {dimension_numbers = #tpu.dot_dimension_numbers<[1], [0], [0], [1], [0, 0, 1, 1], [], []>} : vector<8x32xf32>, vector<32x128xf32>, vector<8x128xf32> -> vector<8x128xf32>
    %c0_3 = arith.constant 0 : index
    %c0_4 = arith.constant 0 : index
    %3 = vector.load %arg3[%c0_3, %c0_4] : memref<1x128xf32, #tpu.memory_space<vmem>>, vector<1x128xf32>
    %4 = vector.broadcast %3 : vector<1x128xf32> to vector<8x128xf32>
    %5 = arith.addf %2, %4 : vector<8x128xf32>
    %c0_5 = arith.constant 0 : index
    %c0_6 = arith.constant 0 : index
    %6 = vector.load %arg4[%c0_5, %c0_6] : memref<8x128xf32, #tpu.memory_space<vmem>>, vector<8x128xf32>
    tpu.vector_store %arg4[%c0_5, %c0_6], %5 {strides = array<i32>} : memref<8x128xf32, #tpu.memory_space<vmem>>, vector<8x128xf32>,
    return
  }
  func.func @transform_0(%arg0: i32) -> (i32, i32) {
    %c0_i32 = arith.constant 0 : i32
    %c0_i32_0 = arith.constant 0 : i32
    return %arg0, %c0_i32 : i32, i32
  }
  func.func @transform_1(%arg0: i32) -> (i32, i32) {
    %c0_i32 = arith.constant 0 : i32
    %c0_i32_0 = arith.constant 0 : i32
    %c0_i32_1 = arith.constant 0 : i32
    return %c0_i32, %c0_i32_0 : i32, i32
  }
  func.func @transform_2(%arg0: i32) -> (i32, i32) {
    %c0_i32 = arith.constant 0 : i32
    %c0_i32_0 = arith.constant 0 : i32
    %c0_i32_1 = arith.constant 0 : i32
    return %c0_i32, %c0_i32_0 : i32, i32
  }
  func.func @transform_3(%arg0: i32) -> (i32, i32) {
    %c0_i32 = arith.constant 0 : i32
    %c0_i32_0 = arith.constant 0 : i32
    return %arg0, %c0_i32 : i32, i32
  }
}

</mosaic_0001>

<bundles_post_ra>
// kernel: tpu_custom_call.1
= control target key start
LH: loop header
LB: loop body
LE: loop exit
PB: predicated region body
PF: predicated region fallthrough
CT: control target
= control target key end

     0   :  { %8 = vsyncpa [#allocation3], 0  ;;  %s233_s0 = inlined_call_operand.hbm [shape: f32[4,32], index: 0, kind: input, shape index: {}]   ;;  %s234_s1 = inlined_call_operand.hbm [shape: f32[32,128], index: 1, kind: input, shape index: {}]   ;;  %s235_s2 = inlined_call_operand.vmem [shape: f32[1,128], index: 2, kind: input, shape index: {}]   ;;  %s236_s3 = inlined_call_operand.hbm [shape: f32[4,128], index: 3, kind: output, shape index: {}]  }
   0x1   :  { %9 = vsyncpa [#allocation6], 0 }
   0x2   :  { %10 = vsyncpa [#allocation4], 0 }
   0x3   :  { %14 = vsyncadd [#allocation3], 64  ;;  %s15_s14 = sshll.u32 %s233_s0, 4  ;;  %s188_s15 = smov [#allocation2]   ;;  %s16_s14 = int_to_ptr.hbm [resolvable:$true] %s15_s14 }
   0x4   :  { %s17_s16 = sshll.u32 %s188_s15, 4  ;;  %s28_s19 = sshll.u32 %s234_s1, 4  ;;  %s18_s16 = int_to_ptr.vmem [resolvable:$true] %s17_s16  ;;  %s29_s19 = int_to_ptr.hbm [resolvable:$true] %s28_s19 }
   0x5   :  { %s189_s20 = smov 64   ;;  %s190_s21 = smov 4  }
   0x6   :  { %23 = dma.hbm_to_vmem [thread:$0]  %s16_s14, 64, %s18_s16, [#allocation3], %s189_s20, %s189_s20, %s190_s21  }
   0x7   :  { %s191_s22 = smov [#allocation5]   ;;  %s192_s24 = smov 128  }
   0x8   :  { %s30_s23 = sshll.u32 %s191_s22, 4  ;;  %s193_s0 = smov 8   ;;  %s31_s23 = int_to_ptr.vmem [resolvable:$true] %s30_s23 }
   0x9   :  { %36 = dma.hbm_to_vmem [thread:$0]  %s29_s19, 512, %s31_s23, [#allocation6], %s192_s24, %s192_s24, %s193_s0  }
   0xa   :  { %182 = dma.done.wait [#allocation3], 128  }
   0xb   :  { %183 = vsyncadd [#allocation3], 4294967168 }
   0xc   :  { %184 = dma.done.wait [#allocation6], 512  }
   0xd   :  { %185 = vsyncadd [#allocation6], 4294966784  ;;  %v51_v0 = vld [vmem:[#allocation5 + $0x18] sm:$0xff]  ;;  %v50_v1 = vld [vmem:[#allocation5 + $0x10] sm:$0xff]  ;;  %vm56_vm0 = vcmask 261120  }
   0xe   :  { %72 = vmatpush.msra.mxu0 %v51_v0  ;;  %v49_v2 = vld [vmem:[#allocation5 + $0x8] sm:$0xff]  ;;  %v48_v3 = vld [vmem:[#allocation5] sm:$0xff]  ;;  %v47_v4 = vld [vmem:[#allocation2] sm:$0xff] }
   0xf   :  { %v109_v5 = vld [vmem:[%s235_s2] ss:$0 sm:$0xff] }
  0x10   :  { %73 = vmatpush.msra.mxu0 %v50_v1 }
  0x12   :  { %74 = vmatpush.msra.mxu0 %v49_v2 }
  0x14   :  { %75 = vmatpush.msra.mxu0 %v48_v3 }
  0x15   :  { %101 = vmatmul.msk.f32.vlgmr.msra.gmra.mxu0 %vm56_vm0, %v47_v4 }
  0x92   :  { %v77_v6 = vpop.f32.mrf.mxu0 }
  0x93   :  { %v78_v7 = vadd.f32 %v109_v5, %v77_v6 }
  0x95   :  { %80 = vst [vmem:[#allocation7] sm:$0xff] %v78_v7 }
  0x96   :  { %84 = vsyncadd [#allocation4], 64  ;;  %s87_s28 = sshll.u32 %s236_s3, 4  ;;  %s194_s29 = smov [#allocation7]   ;;  %s88_s28 = int_to_ptr.hbm [resolvable:$true] %s87_s28 }
  0x97   :  { %s85_s30 = sshll.u32 %s194_s29, 4  ;;  %s86_s30 = int_to_ptr.vmem [resolvable:$true] %s85_s30 }
  0x98   :  { %93 = dma.vmem_to_hbm [thread:$0]  %s86_s30, 64, %s88_s28, [#allocation4], %s189_s20, %s189_s20, %s190_s21  }
  0x99   :  { %186 = dma.done.wait [#allocation4], 128  }
  0x9a   :  { %187 = vsyncadd [#allocation4], 4294967168 }
  0x9b   :  { %98 = vsyncpa [#allocation3], 1 }
  0x9c   :  { %99 = vsyncpa [#allocation6], 1 }
  0x9d   :  { %100 = vsyncpa [#allocation4], 1 }

</bundles_post_ra>
